<compile_context>
chip_gen: v7x
topology: tpu7x:2x2x1
jax: 0.10.0
libtpu: 0.0.40
codegen_flags: <defaults>
</compile_context>

<pallas_src>
import jax
import jax.numpy as jnp
from jax.experimental import pallas as pl
from jax.experimental.pallas import tpu as pltpu


def _round_up(x, m):
    return ((x + m - 1) // m) * m


def mlp_kernel(x_ref, w1_ref, b1_ref, w2_ref, b2_ref, o_ref):
    # Cast MXU operands to bf16 in VMEM (no extra HBM traffic); accumulate f32.
    x = x_ref[...].astype(jnp.bfloat16)                       # (TB, d_in)
    w1 = w1_ref[...].astype(jnp.bfloat16)                     # (d_in, 32)
    h = jnp.dot(x, w1, preferred_element_type=jnp.float32)    # (TB, 32) f32
    h = jnp.maximum(h + b1_ref[...], 0.0)                     # bias + ReLU in f32
    w2 = w2_ref[...].astype(jnp.bfloat16)                     # (32, d_out)
    y = jnp.dot(h.astype(jnp.bfloat16), w2,
                preferred_element_type=jnp.float32)           # (TB, d_out) f32
    o_ref[...] = (y + b2_ref[...]).astype(o_ref.dtype)


def class_net_forward(x, w1, b1, w2, b2, *, batch_tile=1024):
    """x: (B, C, H, W) f32.  w1: (d_in, 32), b1: (32,), w2: (32, d_out), b2: (d_out,).
    Returns (B, d_out) float32."""
    B = x.shape[0]
    x_flat = x.reshape(B, -1).astype(jnp.float32)   # nn.Flatten(start_dim=1)
    d_in = x_flat.shape[1]
    hid = w1.shape[1]
    d_out = w2.shape[1]

    b1_2d = b1.reshape(1, hid).astype(jnp.float32)
    b2_2d = b2.reshape(1, d_out).astype(jnp.float32)

    # --- per-generation VMEM ceiling (v7x: 64 MiB/core, v5e/v6e: 128 MiB) ---
    try:
        vmem_cap = int(pltpu.get_tpu_info().vmem_capacity_bytes)
    except Exception:
        vmem_cap = 64 << 20          # conservative: v7x per-TensorCore
    vmem_ceiling = max(16 << 20, vmem_cap - (12 << 20))

    lane = lambda n: _round_up(max(n, 1), 128)
    sub = lambda n: _round_up(max(n, 1), 8)

    def footprint(t):
        # Pallas double-buffers every in/out spec by default (incl. the
        # constant-index resident weights/biases); count that explicitly.
        return (2 * t * lane(d_in) * 4            # x tile (f32)
                + 2 * t * lane(d_out) * 4         # out tile (f32)
                + 2 * sub(d_in) * lane(hid) * 4   # W1 (f32)
                + 2 * sub(hid) * lane(d_out) * 4  # W2 (f32)
                + 2 * sub(1) * lane(hid) * 4      # b1
                + 2 * sub(1) * lane(d_out) * 4)   # b2

    # --- batch tile: large for bandwidth, >=2 grid steps for v7x's 2 TCs ---
    tile = min(batch_tile, _round_up(B, 8))
    if B > 16:
        tile = min(tile, _round_up((B + 1) // 2, 8))
    tile = max(8, _round_up(tile, 8))
    while footprint(tile) > vmem_ceiling and tile > 8:
        tile = max(8, _round_up(tile // 2, 8))
    # TODO(synk): for very large flattened d_in (>~10^5) add a second grid axis
    # over d_in ("arbitrary") with an f32 VMEM accumulator instead of loading
    # the full (tile, d_in) row block.

    grid = (pl.cdiv(B, tile),)
    vmem_limit = min(int(footprint(tile) * 1.25) + (2 << 20), vmem_ceiling)

    cost = pl.CostEstimate(
        flops=2 * B * d_in * hid + 2 * B * hid * d_out,
        transcendentals=0,
        bytes_accessed=(B * d_in * 4            # x (f32, read once)
                        + d_in * hid * 4        # W1
                        + hid * d_out * 4       # W2
                        + (hid + d_out) * 4     # biases
                        + B * d_out * 4),       # output (f32)
    )

    out = pl.pallas_call(
        mlp_kernel,
        out_shape=jax.ShapeDtypeStruct((B, d_out), jnp.float32),
        grid_spec=pltpu.PrefetchScalarGridSpec(
            num_scalar_prefetch=0,
            grid=grid,
            in_specs=[
                pl.BlockSpec((tile, d_in), lambda i: (i, 0)),   # x tile over batch
                pl.BlockSpec((d_in, hid), lambda i: (0, 0)),    # W1 (resident)
                pl.BlockSpec((1, hid), lambda i: (0, 0)),       # b1
                pl.BlockSpec((hid, d_out), lambda i: (0, 0)),   # W2 (resident)
                pl.BlockSpec((1, d_out), lambda i: (0, 0)),     # b2
            ],
            out_specs=pl.BlockSpec((tile, d_out), lambda i: (i, 0)),
        ),
        compiler_params=pltpu.CompilerParams(
            dimension_semantics=("parallel",),   # batch axis -> both TCs on v7x
            vmem_limit_bytes=vmem_limit,
        ),
        cost_estimate=cost,
    )(x_flat, w1.astype(jnp.float32), b1_2d, w2.astype(jnp.float32), b2_2d)

    return out


def init_params(key, input_num, hidden, output_num):
    # Deterministic init mimicking nn.Linear's U(-1/sqrt(fan_in), 1/sqrt(fan_in)).
    k1, k2, k3, k4 = jax.random.split(key, 4)
    lim1 = 1.0 / jnp.sqrt(jnp.float32(input_num))
    lim2 = 1.0 / jnp.sqrt(jnp.float32(hidden))
    w1 = jax.random.uniform(k1, (input_num, hidden), jnp.float32, -lim1, lim1)
    b1 = jax.random.uniform(k2, (hidden,), jnp.float32, -lim1, lim1)
    w2 = jax.random.uniform(k3, (hidden, output_num), jnp.float32, -lim2, lim2)
    b2 = jax.random.uniform(k4, (output_num,), jnp.float32, -lim2, lim2)
    return w1, b1, w2, b2


if __name__ == "__main__":
    key = jax.random.PRNGKey(0)
    kx, kp = jax.random.split(key)

    # Small MNIST-like example: batch=16, 1 channel, 8x8 -> inputNum=64, outputNum=10
    B, C, H, W = 16, 1, 8, 8
    input_num = C * H * W
    hidden = 32
    output_num = 10

    x = jax.random.normal(kx, (B, C, H, W), jnp.float32)
    w1, b1, w2, b2 = init_params(kp, input_num, hidden, output_num)

    out = jax.block_until_ready(class_net_forward(x, w1, b1, w2, b2))
    assert out.shape == (B, output_num)

    # Reference with the same bf16 rounding of MXU inputs (f32 accumulation).
    x_flat = x.reshape(B, -1)
    xr = x_flat.astype(jnp.bfloat16).astype(jnp.float32)
    w1r = w1.astype(jnp.bfloat16).astype(jnp.float32)
    w2r = w2.astype(jnp.bfloat16).astype(jnp.float32)
    h_ref = jnp.maximum(xr @ w1r + b1, 0.0)
    ref = h_ref.astype(jnp.bfloat16).astype(jnp.float32) @ w2r + b2
    assert jnp.allclose(out, ref, atol=2e-2, rtol=2e-2), "mismatch vs bf16 reference"

    # Looser sanity check vs. the pure-f32 PyTorch-semantics reference.
    ref_f32 = jnp.maximum(x_flat @ w1 + b1, 0.0) @ w2 + b2
    assert jnp.allclose(out, ref_f32, atol=5e-2, rtol=5e-2), "mismatch vs f32 reference"

    print("KERNEL_OK")
</pallas_src>

<mosaic_0001>
module attributes {stable_mosaic.version = 11 : i64} {
  func.func @mlp_kernel(%arg0: i32, %arg1: memref<16x64xf32, #tpu.memory_space<vmem>>, %arg2: memref<64x32xf32, #tpu.memory_space<vmem>>, %arg3: memref<1x32xf32, #tpu.memory_space<vmem>>, %arg4: memref<32x10xf32, #tpu.memory_space<vmem>>, %arg5: memref<1x10xf32, #tpu.memory_space<vmem>>, %arg6: memref<16x10xf32, #tpu.memory_space<vmem>>) attributes {dimension_semantics = [#tpu.dimension_semantics<parallel>], iteration_bounds = array<i64: 1>, scalar_prefetch = 0 : i64, scratch_operands = 0 : i64, tpu.core_type = #tpu.core_type<tc>, window_params = [{transform_indices = @transform_0, window_bounds = array<i64: 16, 64>}, {pipeline_mode = #tpu.pipeline_mode<synchronous>, transform_indices = @transform_1, window_bounds = array<i64: 64, 32>}, {pipeline_mode = #tpu.pipeline_mode<synchronous>, transform_indices = @transform_2, window_bounds = array<i64: 1, 32>}, {pipeline_mode = #tpu.pipeline_mode<synchronous>, transform_indices = @transform_3, window_bounds = array<i64: 32, 10>}, {pipeline_mode = #tpu.pipeline_mode<synchronous>, transform_indices = @transform_4, window_bounds = array<i64: 1, 10>}, {transform_indices = @transform_5, window_bounds = array<i64: 16, 10>}]} {
    %c0 = arith.constant 0 : index
    %c0_0 = arith.constant 0 : index
    %0 = vector.load %arg1[%c0, %c0_0] : memref<16x64xf32, #tpu.memory_space<vmem>>, vector<16x64xf32>
    %1 = arith.truncf %0 : vector<16x64xf32> to vector<16x64xbf16>
    %c0_1 = arith.constant 0 : index
    %c0_2 = arith.constant 0 : index
    %2 = vector.load %arg2[%c0_1, %c0_2] : memref<64x32xf32, #tpu.memory_space<vmem>>, vector<64x32xf32>
    %3 = arith.truncf %2 : vector<64x32xf32> to vector<64x32xbf16>
    %cst = arith.constant dense<0.000000e+00> : vector<16x32xf32>
    %4 = tpu.matmul %1, %3, %cst {dimension_numbers = #tpu.dot_dimension_numbers<[1], [0], [0], [1], [0, 0, 1, 1], [], []>} : vector<16x64xbf16>, vector<64x32xbf16>, vector<16x32xf32> -> vector<16x32xf32>
    %c0_3 = arith.constant 0 : index
    %c0_4 = arith.constant 0 : index
    %5 = vector.load %arg3[%c0_3, %c0_4] : memref<1x32xf32, #tpu.memory_space<vmem>>, vector<1x32xf32>
    %6 = vector.broadcast %5 : vector<1x32xf32> to vector<16x32xf32>
    %7 = arith.addf %4, %6 : vector<16x32xf32>
    %cst_5 = arith.constant 0.000000e+00 : f32
    %8 = vector.broadcast %cst_5 : f32 to vector<16x32xf32>
    %9 = arith.maximumf %7, %8 : vector<16x32xf32>
    %c0_6 = arith.constant 0 : index
    %c0_7 = arith.constant 0 : index
    %10 = vector.load %arg4[%c0_6, %c0_7] : memref<32x10xf32, #tpu.memory_space<vmem>>, vector<32x10xf32>
    %11 = arith.truncf %10 : vector<32x10xf32> to vector<32x10xbf16>
    %12 = arith.truncf %9 : vector<16x32xf32> to vector<16x32xbf16>
    %cst_8 = arith.constant dense<0.000000e+00> : vector<16x10xf32>
    %13 = tpu.matmul %12, %11, %cst_8 {dimension_numbers = #tpu.dot_dimension_numbers<[1], [0], [0], [1], [0, 0, 1, 1], [], []>} : vector<16x32xbf16>, vector<32x10xbf16>, vector<16x10xf32> -> vector<16x10xf32>
    %c0_9 = arith.constant 0 : index
    %c0_10 = arith.constant 0 : index
    %14 = vector.load %arg5[%c0_9, %c0_10] : memref<1x10xf32, #tpu.memory_space<vmem>>, vector<1x10xf32>
    %15 = vector.broadcast %14 : vector<1x10xf32> to vector<16x10xf32>
    %16 = arith.addf %13, %15 : vector<16x10xf32>
    %c0_11 = arith.constant 0 : index
    %c0_12 = arith.constant 0 : index
    %17 = vector.load %arg6[%c0_11, %c0_12] : memref<16x10xf32, #tpu.memory_space<vmem>>, vector<16x10xf32>
    tpu.vector_store %arg6[%c0_11, %c0_12], %16 {strides = array<i32>} : memref<16x10xf32, #tpu.memory_space<vmem>>, vector<16x10xf32>,
    return
  }
  func.func @transform_0(%arg0: i32) -> (i32, i32) {
    %c0_i32 = arith.constant 0 : i32
    %c0_i32_0 = arith.constant 0 : i32
    return %arg0, %c0_i32 : i32, i32
  }
  func.func @transform_1(%arg0: i32) -> (i32, i32) {
    %c0_i32 = arith.constant 0 : i32
    %c0_i32_0 = arith.constant 0 : i32
    %c0_i32_1 = arith.constant 0 : i32
    return %c0_i32, %c0_i32_0 : i32, i32
  }
  func.func @transform_2(%arg0: i32) -> (i32, i32) {
    %c0_i32 = arith.constant 0 : i32
    %c0_i32_0 = arith.constant 0 : i32
    %c0_i32_1 = arith.constant 0 : i32
    return %c0_i32, %c0_i32_0 : i32, i32
  }
  func.func @transform_3(%arg0: i32) -> (i32, i32) {
    %c0_i32 = arith.constant 0 : i32
    %c0_i32_0 = arith.constant 0 : i32
    %c0_i32_1 = arith.constant 0 : i32
    return %c0_i32, %c0_i32_0 : i32, i32
  }
  func.func @transform_4(%arg0: i32) -> (i32, i32) {
    %c0_i32 = arith.constant 0 : i32
    %c0_i32_0 = arith.constant 0 : i32
    %c0_i32_1 = arith.constant 0 : i32
    return %c0_i32, %c0_i32_0 : i32, i32
  }
  func.func @transform_5(%arg0: i32) -> (i32, i32) {
    %c0_i32 = arith.constant 0 : i32
    %c0_i32_0 = arith.constant 0 : i32
    return %arg0, %c0_i32 : i32, i32
  }
}

</mosaic_0001>

<bundles_post_ra>
// kernel: tpu_custom_call.1
= control target key start
LH: loop header
LB: loop body
LE: loop exit
PB: predicated region body
PF: predicated region fallthrough
CT: control target
= control target key end

     0   :  { %v230_v3 = vmov 0.0   ;;  %vm231_vm0 = vmmov 0   ;;  %s325_s0 = inlined_call_operand.vmem [shape: f32[16,64], index: 0, kind: input, shape index: {}]   ;;  %s326_s1 = inlined_call_operand.vmem [shape: f32[64,32], index: 1, kind: input, shape index: {}]   ;;  %s327_s2 = inlined_call_operand.vmem [shape: f32[1,32], index: 2, kind: input, shape index: {}]   ;;  %s328_s3 = inlined_call_operand.vmem [shape: f32[32,10], index: 3, kind: input, shape index: {}]   ;;  %s329_s4 = inlined_call_operand.vmem [shape: f32[1,10], index: 4, kind: input, shape index: {}]   ;;  %s330_s5 = inlined_call_operand.hbm [shape: f32[16,10], index: 5, kind: output, shape index: {}]  }
   0x1   :  { %v25_v0 = vld [vmem:[%s326_s1] sm:$0xff]  ;;  %v26_v1 = vld [vmem:[%s326_s1 + $0x8] sm:$0xff]  ;;  %v27_v2 = vld [vmem:[%s326_s1 + $0x10] sm:$0xff]  ;;  %181 = vmatprep.subr.bf16.mxu0 %v230_v3  ;;  %189 = vmatprep.mubr.msk.bf16.mxu0 %vm231_vm0, %v230_v3 }
   0x2   :  { %v33_v4 = vpack.c.bf16 %v26_v1, %v25_v0  ;;  %v28_v5 = vld [vmem:[%s326_s1 + $0x18] sm:$0xff]  ;;  %193 = vmatprep.subr.bf16.mxu1 %v230_v3  ;;  %197 = vmatprep.mubr.msk.bf16.mxu1 %vm231_vm0, %v230_v3 }
   0x3   :  { %v34_v6 = vpack.c.bf16 %v28_v5, %v27_v2 }
   0x4   :  { %182 = vmatpush3.bf16.msra.mxu0 %v33_v4 }
   0x5   :  { %10 = vsyncpa [#allocation3], 0  ;;  %183 = vmatprep.subr.bf16.mxu0 %v230_v3  ;;  %v29_v7 = vld [vmem:[%s326_s1 + $0x20] sm:$0xff]  ;;  %v30_v8 = vld [vmem:[%s326_s1 + $0x28] sm:$0xff]  ;;  %vm44_vm1 = vcmask 523264   ;;  %vm105_vm2 = vcmask 261120  }
   0x6   :  { %v35_v9 = vpack.c.bf16 %v30_v8, %v29_v7  ;;  %v31_v10 = vld [vmem:[%s326_s1 + $0x30] sm:$0xff]  ;;  %v32_v11 = vld [vmem:[%s326_s1 + $0x38] sm:$0xff]  ;;  %v22_v13 = vld [vmem:[%s325_s0] sm:$0xff]  ;;  %vm150_vm3 = vcmask 80896  }
   0x7   :  { %v36_v12 = vpack.c.bf16 %v32_v11, %v31_v10  ;;  %v23_v14 = vld [vmem:[%s325_s0 + $0x8] sm:$0xff]  ;;  %v91_v16 = vld [vmem:[%s328_s3] sm:$0xff]  ;;  %v93_v19 = vld [vmem:[%s328_s3 + $0x10] sm:$0xff] }
   0x8   :  { %184 = vmatpush3.bf16.msra.mxu0 %v34_v6  ;;  %v24_v15 = vpack.c.bf16 %v23_v14, %v22_v13  ;;  %v92_v17 = vld [vmem:[%s328_s3 + $0x8] sm:$0xff]  ;;  %v94_v20 = vld [vmem:[%s328_s3 + $0x18] sm:$0xff]  ;;  %v169_v22 = vld [vmem:[%s327_s2] ss:$0 sm:$0xff]  ;;  %s232_s3 = smov [#allocation2]  }
   0x9   :  { %185 = vmatprep.subr.bf16.mxu0 %v230_v3  ;;  %v95_v18 = vpack.c.bf16 %v92_v17, %v91_v16  ;;  %v96_v21 = vpack.c.bf16 %v94_v20, %v93_v19  ;;  %v171_v32 = vld [vmem:[%s329_s4] ss:$0 sm:$0xff]  ;;  %s158_s23 = sshll.u32 %s232_s3, 4  ;;  %s159_s23 = int_to_ptr.vmem [resolvable:$true] %s158_s23 }
   0xa   :  { %s206_s2 = scalar_lea.vmem %s159_s23, 256  ;;  %p211_p1 = scmp.lt.s32.totalorder %s159_s23, %s159_s23 }
   0xb   :  { %194 = vmatpush3.bf16.msra.mxu1 %v95_v18  ;;  %p207_p0 = scmp.ne.s32.totalorder %s159_s23, %s206_s2  ;;  %p212_p2 = scmp.lt.s32.totalorder %s206_s2, %s206_s2 }
   0xc   :  { %186 = vmatpush3.bf16.msra.mxu0 %v35_v9  ;;  %195 = vmatprep.subr.bf16.mxu1 %v230_v3 }
   0xd   :  { %187 = vmatprep.subr.bf16.mxu0 %v230_v3  ;;  %p213_p3 = por %p212_p2, %p211_p1 }
   0xf   :  { %196 = vmatpush3.bf16.msra.mxu1 %v96_v21  ;;  %p214_p4 = pnand %p213_p3, %p207_p0 }
  0x10   :  { %188 = vmatpush3.bf16.msra.mxu0 %v36_v12 }
  0x13   :  { %190 = vmatmul.mubr.msk.bf16.vlgmr.msra.gmra.mrb[0].mxu0 %vm44_vm1, %v24_v15 }
  0xe6   :  { %v82_v23 = vpop.f32.mrb[0].mxu0 }
  0xe7   :  { %v83_v24 = vadd.f32 %v169_v22, %v82_v23  ;;  %v191_v25 = vpop.f32.mrb[1].mxu0 }
  0xe8   :  { %v85_v26 = vpop.f32.mrb[2].mxu0 }
  0xe9   :  { %v86_v27 = vadd.f32 %v169_v22, %v85_v26  ;;  %v192_v28 = vpop.f32.mrb[3].mxu0  ;;  %v89_v29 = vmax.f32 %v83_v24, 0.0 }
  0xeb   :  { %v90_v30 = vmax.f32 %v86_v27, 0.0 }
  0xed   :  { %v97_v31 = vpack.c.bf16 %v90_v30, %v89_v29 }
  0xef   :  { %198 = vmatmul.mubr.msk.bf16.vlgmr.msra.gmra.mrb[0].mxu1 %vm105_vm2, %v97_v31 }
 0x1c2   :  { %v143_v33 = vpop.f32.mrb[0].mxu1 }
 0x1c3   :  { %v144_v34 = vadd.f32 %v171_v32, %v143_v33  ;;  %v199_v35 = vpop.f32.mrb[1].mxu1 }
 0x1c4   :  { %v146_v36 = vpop.f32.mrb[2].mxu1 }
 0x1c5   :  { %151 = vst.msk [vmem:[#allocation2] sm:$0xff] %vm150_vm3, %v144_v34  ;;  %v147_v37 = vadd.f32 %v171_v32, %v146_v36  ;;  %v200_v38 = vpop.f32.mrb[3].mxu1 }
 0x1c7   :  { %152 = vst.msk [vmem:[#allocation2 + $0x8] sm:$0xff] %vm150_vm3, %v147_v37 }
 0x1c8   :  { %217 = shalt.err (!%p214_p4)
}
 0x1c9   :  { %s218_s25 = scalar_lea.hbm %s330_s5, 256 }
 0x1ca   :  { %p219_p5 = scmp.ne.s32.totalorder %s330_s5, %s218_s25  ;;  %p222_p6 = scmp.lt.u32.totalorder %s218_s25, %s330_s5 }
 0x1cc   :  { %p224_p7 = pnand %p222_p6, %p219_p5 }
 0x1ce   :  { %227 = shalt.err (!%p224_p7)
}
 0x1cf   :  { %s233_s30 = smov 128   ;;  %s234_s6 = smov 8  }
 0x1d0   :  { %164 = dma.vmem_to_hbm [thread:$0]  %s159_s23, 256, %s330_s5, [#allocation3], %s233_s30, %s233_s30, %s234_s6  }
 0x1d1   :  { %228 = dma.done.wait [#allocation3], 256  }
 0x1d2   :  { %229 = vsyncadd [#allocation3], 4294967040 }
 0x1d3   :  { %168 = vsyncpa [#allocation3], 1 }

</bundles_post_ra>
